<compile_context>
chip_gen: v7x
topology: tpu7x:2x2x1
jax: 0.10.0
libtpu: 0.0.40
codegen_flags: <defaults>
</compile_context>

<pallas_src>
import jax
import jax.numpy as jnp
from jax.experimental import pallas as pl
from jax.experimental.pallas import tpu as pltpu


def _prompt_learner_kernel(im_ref, w1_ref, b1_ref, w2_ref, b2_ref,
                           ctx_ref, prefix_ref, suffix_ref, out_ref):
    """One grid step == one (batch element, class tile).

    im_ref:     (1, 1, V)         image features for this batch element
    w1_ref:     (V, H)            meta_net.linear1 weight, pre-transposed to (in, out)
    b1_ref:     (1, H)            meta_net.linear1 bias
    w2_ref:     (H, D)            meta_net.linear2 weight, pre-transposed to (in, out)
    b2_ref:     (1, D)            meta_net.linear2 bias
    ctx_ref:    (n_ctx, D)        learnable context vectors (pre-cast to out dtype)
    prefix_ref: (Ct, 1, D)        token_prefix tile (pre-cast to out dtype)
    suffix_ref: (Ct, L_suf, D)    token_suffix tile (pre-cast to out dtype)
    out_ref:    (1, Ct, T, D)     prompts tile, T = 1 + n_ctx + L_suf
    """
    n_ctx, ctx_dim = ctx_ref.shape
    ct = out_ref.shape[1]

    # ---- meta_net MLP on the MXU (f32 accumulate; tiny, recomputed per step) --
    x = im_ref[0].astype(jnp.float32)                                  # (1, V)
    h = jnp.dot(x, w1_ref[...].astype(jnp.float32),
                preferred_element_type=jnp.float32)                    # (1, H)
    h = jnp.maximum(h + b1_ref[...].astype(jnp.float32), 0.0)          # ReLU
    bias = jnp.dot(h, w2_ref[...].astype(jnp.float32),
                   preferred_element_type=jnp.float32)                 # (1, D)
    bias = bias + b2_ref[...].astype(jnp.float32)

    # ctx_shifted = ctx + bias; cast to output dtype BEFORE broadcasting so the
    # broadcast temp is small and in the narrow dtype.
    ctx_shifted = (ctx_ref[...].astype(jnp.float32) + bias).astype(out_ref.dtype)

    # ---- assemble prompts = [prefix | ctx_shifted | suffix] per class --------
    # prefix/suffix were pre-cast host-side -> pure copies here.
    out_ref[0, :, 0:1, :] = prefix_ref[...]
    out_ref[0, :, 1:1 + n_ctx, :] = jnp.broadcast_to(
        ctx_shifted[None, :, :], (ct, n_ctx, ctx_dim))
    out_ref[0, :, 1 + n_ctx:, :] = suffix_ref[...]


def prompt_learner_forward(im_features, ctx, token_prefix, token_suffix,
                           w1, b1, w2, b2, *, class_tile=None):
    """Pallas forward of PromptLearner.

    im_features:  (B, V)
    ctx:          (n_ctx, D)
    token_prefix: (n_cls, 1, D)
    token_suffix: (n_cls, L_suf, D)
    w1: (H, V)   b1: (H,)     [linear1, PyTorch (out, in) layout, H = V // 16]
    w2: (D, H)   b2: (D,)     [linear2, PyTorch (out, in) layout]

    Returns prompts: (B, n_cls, 1 + n_ctx + L_suf, D)
    """
    B, vis_dim = im_features.shape
    n_ctx, ctx_dim = ctx.shape
    n_cls = token_prefix.shape[0]
    l_suf = token_suffix.shape[1]
    T = 1 + n_ctx + l_suf
    hidden = w1.shape[0]

    # torch.cat-style dtype promotion across the concatenated pieces.
    out_dtype = jnp.result_type(ctx.dtype, token_prefix.dtype, token_suffix.dtype)
    itemsize = jnp.dtype(out_dtype).itemsize

    # Class-axis tiling: target ~4 MiB output blocks (1-8 MiB sweet spot).
    if class_tile is None:
        class_tile = max(1, (4 * 1024 * 1024) // (T * ctx_dim * itemsize))
    class_tile = int(min(class_tile, n_cls))
    grid_c = pl.cdiv(n_cls, class_tile)

    # Layout plumbing / one-time host-side casts (no per-step work):
    w1_vh = jnp.transpose(w1)                        # (V, H)
    w2_hd = jnp.transpose(w2)                        # (H, D)
    b1_2d = b1.reshape(1, hidden)                    # (1, H)
    b2_2d = b2.reshape(1, ctx_dim)                   # (1, D)
    im_3d = im_features.reshape(B, 1, vis_dim)       # (B, 1, V)
    ctx_c = ctx.astype(out_dtype)
    prefix_c = token_prefix.astype(out_dtype)
    suffix_c = token_suffix.astype(out_dtype)

    # Constant-index-map inputs never change across the grid -> single-buffer.
    const_kw = dict(pipeline_mode=pl.Buffered(1))

    # Advisory cost: this call is HBM-store bound.
    out_bytes = B * n_cls * T * ctx_dim * itemsize
    in_bytes = (B * (prefix_c.size + suffix_c.size) * itemsize
                + im_3d.size * im_3d.dtype.itemsize
                + w1_vh.size * w1_vh.dtype.itemsize
                + w2_hd.size * w2_hd.dtype.itemsize
                + ctx_c.size * itemsize
                + b1_2d.size * b1_2d.dtype.itemsize
                + b2_2d.size * b2_2d.dtype.itemsize)
    flops = 2 * B * (vis_dim * hidden + hidden * ctx_dim) + B * n_ctx * ctx_dim
    cost = pl.CostEstimate(flops=int(flops), transcendentals=0,
                           bytes_accessed=int(out_bytes + in_bytes))

    return pl.pallas_call(
        _prompt_learner_kernel,
        out_shape=jax.ShapeDtypeStruct((B, n_cls, T, ctx_dim), out_dtype),
        grid=(B, grid_c),
        in_specs=[
            pl.BlockSpec((1, 1, vis_dim), lambda b, c: (b, 0, 0)),            # im_features
            pl.BlockSpec((vis_dim, hidden), lambda b, c: (0, 0), **const_kw),  # w1^T (resident)
            pl.BlockSpec((1, hidden), lambda b, c: (0, 0), **const_kw),        # b1
            pl.BlockSpec((hidden, ctx_dim), lambda b, c: (0, 0), **const_kw),  # w2^T
            pl.BlockSpec((1, ctx_dim), lambda b, c: (0, 0), **const_kw),       # b2
            pl.BlockSpec((n_ctx, ctx_dim), lambda b, c: (0, 0), **const_kw),   # ctx
            pl.BlockSpec((class_tile, 1, ctx_dim), lambda b, c: (c, 0, 0)),    # token_prefix tile
            pl.BlockSpec((class_tile, l_suf, ctx_dim), lambda b, c: (c, 0, 0)),# token_suffix tile
        ],
        out_specs=pl.BlockSpec((1, class_tile, T, ctx_dim),
                               lambda b, c: (b, c, 0, 0)),
        compiler_params=pltpu.CompilerParams(
            # Every grid step is independent -> both axes can be sharded across
            # TensorCores (helps v7x when B is small).
            dimension_semantics=("parallel", "parallel"),
            vmem_limit_bytes=32 * 1024 * 1024,   # plenty with ~4 MiB blocks; safe on v5e/v6e/v7x
        ),
        cost_estimate=cost,
    )(im_3d, w1_vh, b1_2d, w2_hd, b2_2d, ctx_c, prefix_c, suffix_c)


if __name__ == "__main__":
    key = jax.random.PRNGKey(0)
    keys = jax.random.split(key, 8)

    # Small shapes consistent with the module (real CLIP: V=512/1024, D=512, T=77).
    B, vis_dim = 2, 128
    hidden = vis_dim // 16            # meta_net hidden = vis_dim // 16
    n_cls, n_ctx, ctx_dim = 4, 4, 128
    T = 16                            # total prompt length (prefix + ctx + suffix)
    l_suf = T - 1 - n_ctx             # 11 suffix tokens

    im_features = jax.random.normal(keys[0], (B, vis_dim), jnp.float32)
    ctx = 0.02 * jax.random.normal(keys[1], (n_ctx, ctx_dim), jnp.float32)
    token_prefix = jax.random.normal(keys[2], (n_cls, 1, ctx_dim), jnp.float32)
    token_suffix = jax.random.normal(keys[3], (n_cls, l_suf, ctx_dim), jnp.float32)

    # nn.Linear default init: U(-1/sqrt(fan_in), 1/sqrt(fan_in)).
    bound1 = 1.0 / float(jnp.sqrt(jnp.float32(vis_dim)))
    w1 = jax.random.uniform(keys[4], (hidden, vis_dim), jnp.float32, -bound1, bound1)
    b1 = jax.random.uniform(keys[5], (hidden,), jnp.float32, -bound1, bound1)
    bound2 = 1.0 / float(jnp.sqrt(jnp.float32(hidden)))
    w2 = jax.random.uniform(keys[6], (ctx_dim, hidden), jnp.float32, -bound2, bound2)
    b2 = jax.random.uniform(keys[7], (ctx_dim,), jnp.float32, -bound2, bound2)

    # class_tile=2 to exercise the tiled-class grid (grid = (2, 2)).
    prompts = prompt_learner_forward(im_features, ctx, token_prefix, token_suffix,
                                     w1, b1, w2, b2, class_tile=2)
    prompts = jax.block_until_ready(prompts)

    # Pure-JAX reference mirroring the PyTorch forward.
    h_ref = jnp.maximum(
        jnp.dot(im_features, w1.T, precision=jax.lax.Precision.HIGHEST) + b1, 0.0)
    bias_ref = jnp.dot(h_ref, w2.T, precision=jax.lax.Precision.HIGHEST) + b2      # (B, D)
    ctx_shift = ctx[None, :, :] + bias_ref[:, None, :]                              # (B, n_ctx, D)
    ctx_exp = jnp.broadcast_to(ctx_shift[:, None], (B, n_cls, n_ctx, ctx_dim))
    pre_exp = jnp.broadcast_to(token_prefix[None], (B, n_cls, 1, ctx_dim))
    suf_exp = jnp.broadcast_to(token_suffix[None], (B, n_cls, l_suf, ctx_dim))

    assert prompts.shape == (B, n_cls, T, ctx_dim), prompts.shape
    # Prefix / suffix paths are pure copies -> exact.
    assert bool(jnp.array_equal(prompts[:, :, 0:1, :], pre_exp)), "prefix mismatch"
    assert bool(jnp.array_equal(prompts[:, :, 1 + n_ctx:, :], suf_exp)), "suffix mismatch"
    # ctx + meta-net path goes through the MXU (f32 accumulate); allow matmul-
    # precision slack vs the HIGHEST-precision reference.
    assert jnp.allclose(prompts[:, :, 1:1 + n_ctx, :], ctx_exp,
                        atol=2e-2, rtol=2e-2), "ctx_shifted mismatch vs reference"

    print("KERNEL_OK")
</pallas_src>

<mosaic_0001>
module attributes {stable_mosaic.version = 11 : i64} {
  func.func @_prompt_learner_kernel(%arg0: i32, %arg1: i32, %arg2: memref<1x1x128xf32, #tpu.memory_space<vmem>>, %arg3: memref<128x8xf32, #tpu.memory_space<vmem>>, %arg4: memref<1x8xf32, #tpu.memory_space<vmem>>, %arg5: memref<8x128xf32, #tpu.memory_space<vmem>>, %arg6: memref<1x128xf32, #tpu.memory_space<vmem>>, %arg7: memref<4x128xf32, #tpu.memory_space<vmem>>, %arg8: memref<2x1x128xf32, #tpu.memory_space<vmem>>, %arg9: memref<2x11x128xf32, #tpu.memory_space<vmem>>, %arg10: memref<1x2x16x128xf32, #tpu.memory_space<vmem>>) attributes {dimension_semantics = [#tpu.dimension_semantics<parallel>, #tpu.dimension_semantics<parallel>], iteration_bounds = array<i64: 2, 2>, scalar_prefetch = 0 : i64, scratch_operands = 0 : i64, tpu.core_type = #tpu.core_type<tc>, window_params = [{transform_indices = @transform_0, window_bounds = array<i64: 1, 1, 128>}, {pipeline_mode = #tpu.pipeline_mode<synchronous>, transform_indices = @transform_1, window_bounds = array<i64: 128, 8>}, {pipeline_mode = #tpu.pipeline_mode<synchronous>, transform_indices = @transform_2, window_bounds = array<i64: 1, 8>}, {pipeline_mode = #tpu.pipeline_mode<synchronous>, transform_indices = @transform_3, window_bounds = array<i64: 8, 128>}, {pipeline_mode = #tpu.pipeline_mode<synchronous>, transform_indices = @transform_4, window_bounds = array<i64: 1, 128>}, {pipeline_mode = #tpu.pipeline_mode<synchronous>, transform_indices = @transform_5, window_bounds = array<i64: 4, 128>}, {transform_indices = @transform_6, window_bounds = array<i64: 2, 1, 128>}, {transform_indices = @transform_7, window_bounds = array<i64: 2, 11, 128>}, {transform_indices = @transform_8, window_bounds = array<i64: 1, 2, 16, 128>}]} {
    %c0 = arith.constant 0 : index
    %c0_0 = arith.constant 0 : index
    %c0_1 = arith.constant 0 : index
    %0 = vector.load %arg2[%c0, %c0_0, %c0_1] : memref<1x1x128xf32, #tpu.memory_space<vmem>>, vector<1x1x128xf32>
    %1 = vector.shape_cast %0 : vector<1x1x128xf32> to vector<1x128xf32>
    %c0_2 = arith.constant 0 : index
    %c0_3 = arith.constant 0 : index
    %2 = vector.load %arg3[%c0_2, %c0_3] : memref<128x8xf32, #tpu.memory_space<vmem>>, vector<128x8xf32>
    %cst = arith.constant dense<0.000000e+00> : vector<1x8xf32>
    %3 = tpu.matmul %1, %2, %cst {dimension_numbers = #tpu.dot_dimension_numbers<[1], [0], [0], [1], [0, 0, 1, 1], [], []>} : vector<1x128xf32>, vector<128x8xf32>, vector<1x8xf32> -> vector<1x8xf32>
    %c0_4 = arith.constant 0 : index
    %c0_5 = arith.constant 0 : index
    %4 = vector.load %arg4[%c0_4, %c0_5] : memref<1x8xf32, #tpu.memory_space<vmem>>, vector<1x8xf32>
    %5 = arith.addf %3, %4 : vector<1x8xf32>
    %cst_6 = arith.constant 0.000000e+00 : f32
    %6 = vector.broadcast %cst_6 : f32 to vector<1x8xf32>
    %7 = arith.maximumf %5, %6 : vector<1x8xf32>
    %c0_7 = arith.constant 0 : index
    %c0_8 = arith.constant 0 : index
    %8 = vector.load %arg5[%c0_7, %c0_8] : memref<8x128xf32, #tpu.memory_space<vmem>>, vector<8x128xf32>
    %cst_9 = arith.constant dense<0.000000e+00> : vector<1x128xf32>
    %9 = tpu.matmul %7, %8, %cst_9 {dimension_numbers = #tpu.dot_dimension_numbers<[1], [0], [0], [1], [0, 0, 1, 1], [], []>} : vector<1x8xf32>, vector<8x128xf32>, vector<1x128xf32> -> vector<1x128xf32>
    %c0_10 = arith.constant 0 : index
    %c0_11 = arith.constant 0 : index
    %10 = vector.load %arg6[%c0_10, %c0_11] : memref<1x128xf32, #tpu.memory_space<vmem>>, vector<1x128xf32>
    %11 = arith.addf %9, %10 : vector<1x128xf32>
    %c0_12 = arith.constant 0 : index
    %c0_13 = arith.constant 0 : index
    %12 = vector.load %arg7[%c0_12, %c0_13] : memref<4x128xf32, #tpu.memory_space<vmem>>, vector<4x128xf32>
    %13 = vector.broadcast %11 : vector<1x128xf32> to vector<4x128xf32>
    %14 = arith.addf %12, %13 : vector<4x128xf32>
    %c0_14 = arith.constant 0 : index
    %c0_15 = arith.constant 0 : index
    %c0_16 = arith.constant 0 : index
    %15 = vector.load %arg8[%c0_14, %c0_15, %c0_16] : memref<2x1x128xf32, #tpu.memory_space<vmem>>, vector<2x1x128xf32>
    %c0_17 = arith.constant 0 : index
    %c0_18 = arith.constant 0 : index
    %c0_19 = arith.constant 0 : index
    %c0_20 = arith.constant 0 : index
    %16 = vector.load %arg10[%c0_17, %c0_18, %c0_19, %c0_20] : memref<1x2x16x128xf32, #tpu.memory_space<vmem>>, vector<1x2x1x128xf32>
    %17 = vector.shape_cast %16 : vector<1x2x1x128xf32> to vector<2x1x128xf32>
    %18 = vector.shape_cast %15 : vector<2x1x128xf32> to vector<1x2x1x128xf32>
    tpu.vector_store %arg10[%c0_17, %c0_18, %c0_19, %c0_20], %18 {strides = array<i32>} : memref<1x2x16x128xf32, #tpu.memory_space<vmem>>, vector<1x2x1x128xf32>,
    %19 = vector.shape_cast %14 : vector<4x128xf32> to vector<1x4x128xf32>
    %20 = vector.shape_cast %19 : vector<1x4x128xf32> to vector<1x4x128xf32>
    %21 = vector.broadcast %20 : vector<1x4x128xf32> to vector<2x4x128xf32>
    %c0_21 = arith.constant 0 : index
    %c0_22 = arith.constant 0 : index
    %c1 = arith.constant 1 : index
    %c0_23 = arith.constant 0 : index
    %22 = vector.load %arg10[%c0_21, %c0_22, %c1, %c0_23] : memref<1x2x16x128xf32, #tpu.memory_space<vmem>>, vector<1x2x4x128xf32>
    %23 = vector.shape_cast %22 : vector<1x2x4x128xf32> to vector<2x4x128xf32>
    %24 = vector.shape_cast %21 : vector<2x4x128xf32> to vector<1x2x4x128xf32>
    tpu.vector_store %arg10[%c0_21, %c0_22, %c1, %c0_23], %24 {strides = array<i32>} : memref<1x2x16x128xf32, #tpu.memory_space<vmem>>, vector<1x2x4x128xf32>,
    %c0_24 = arith.constant 0 : index
    %c0_25 = arith.constant 0 : index
    %c0_26 = arith.constant 0 : index
    %25 = vector.load %arg9[%c0_24, %c0_25, %c0_26] : memref<2x11x128xf32, #tpu.memory_space<vmem>>, vector<2x11x128xf32>
    %c0_27 = arith.constant 0 : index
    %c0_28 = arith.constant 0 : index
    %c5 = arith.constant 5 : index
    %c0_29 = arith.constant 0 : index
    %26 = vector.load %arg10[%c0_27, %c0_28, %c5, %c0_29] : memref<1x2x16x128xf32, #tpu.memory_space<vmem>>, vector<1x2x11x128xf32>
    %27 = vector.shape_cast %26 : vector<1x2x11x128xf32> to vector<2x11x128xf32>
    %28 = vector.shape_cast %25 : vector<2x11x128xf32> to vector<1x2x11x128xf32>
    tpu.vector_store %arg10[%c0_27, %c0_28, %c5, %c0_29], %28 {strides = array<i32>} : memref<1x2x16x128xf32, #tpu.memory_space<vmem>>, vector<1x2x11x128xf32>,
    return
  }
  func.func @transform_0(%arg0: i32, %arg1: i32) -> (i32, i32, i32) {
    %c0_i32 = arith.constant 0 : i32
    %c0_i32_0 = arith.constant 0 : i32
    %c0_i32_1 = arith.constant 0 : i32
    return %arg0, %c0_i32, %c0_i32_0 : i32, i32, i32
  }
  func.func @transform_1(%arg0: i32, %arg1: i32) -> (i32, i32) {
    %c0_i32 = arith.constant 0 : i32
    %c0_i32_0 = arith.constant 0 : i32
    %c0_i32_1 = arith.constant 0 : i32
    return %c0_i32, %c0_i32_0 : i32, i32
  }
  func.func @transform_2(%arg0: i32, %arg1: i32) -> (i32, i32) {
    %c0_i32 = arith.constant 0 : i32
    %c0_i32_0 = arith.constant 0 : i32
    %c0_i32_1 = arith.constant 0 : i32
    return %c0_i32, %c0_i32_0 : i32, i32
  }
  func.func @transform_3(%arg0: i32, %arg1: i32) -> (i32, i32) {
    %c0_i32 = arith.constant 0 : i32
    %c0_i32_0 = arith.constant 0 : i32
    %c0_i32_1 = arith.constant 0 : i32
    return %c0_i32, %c0_i32_0 : i32, i32
  }
  func.func @transform_4(%arg0: i32, %arg1: i32) -> (i32, i32) {
    %c0_i32 = arith.constant 0 : i32
    %c0_i32_0 = arith.constant 0 : i32
    %c0_i32_1 = arith.constant 0 : i32
    return %c0_i32, %c0_i32_0 : i32, i32
  }
  func.func @transform_5(%arg0: i32, %arg1: i32) -> (i32, i32) {
    %c0_i32 = arith.constant 0 : i32
    %c0_i32_0 = arith.constant 0 : i32
    %c0_i32_1 = arith.constant 0 : i32
    return %c0_i32, %c0_i32_0 : i32, i32
  }
  func.func @transform_6(%arg0: i32, %arg1: i32) -> (i32, i32, i32) {
    %c0_i32 = arith.constant 0 : i32
    %c0_i32_0 = arith.constant 0 : i32
    %c0_i32_1 = arith.constant 0 : i32
    return %arg1, %c0_i32, %c0_i32_0 : i32, i32, i32
  }
  func.func @transform_7(%arg0: i32, %arg1: i32) -> (i32, i32, i32) {
    %c0_i32 = arith.constant 0 : i32
    %c0_i32_0 = arith.constant 0 : i32
    %c0_i32_1 = arith.constant 0 : i32
    return %arg1, %c0_i32, %c0_i32_0 : i32, i32, i32
  }
  func.func @transform_8(%arg0: i32, %arg1: i32) -> (i32, i32, i32, i32) {
    %c0_i32 = arith.constant 0 : i32
    %c0_i32_0 = arith.constant 0 : i32
    %c0_i32_1 = arith.constant 0 : i32
    return %arg0, %arg1, %c0_i32, %c0_i32_0 : i32, i32, i32, i32
  }
}

</mosaic_0001>

<bundles_post_ra>
// kernel: tpu_custom_call.1
= control target key start
LH: loop header
LB: loop body
LE: loop exit
PB: predicated region body
PF: predicated region fallthrough
CT: control target
= control target key end

     0   :  { %s1188_s0 = inlined_call_operand.vmem [shape: f32[2,1,128], index: 0, kind: input, shape index: {}]   ;;  %s1189_s1 = inlined_call_operand.vmem [shape: f32[128,8], index: 1, kind: input, shape index: {}]   ;;  %s1190_s2 = inlined_call_operand.vmem [shape: f32[1,8], index: 2, kind: input, shape index: {}]   ;;  %s1191_s3 = inlined_call_operand.vmem [shape: f32[8,128], index: 3, kind: input, shape index: {}]   ;;  %s1192_s4 = inlined_call_operand.vmem [shape: f32[1,128], index: 4, kind: input, shape index: {}]   ;;  %s1193_s5 = inlined_call_operand.vmem [shape: f32[4,128], index: 5, kind: input, shape index: {}]   ;;  %s1194_s6 = inlined_call_operand.vmem [shape: f32[4,1,128], index: 6, kind: input, shape index: {}]   ;;  %s1195_s7 = inlined_call_operand.vmem [shape: f32[4,11,128], index: 7, kind: input, shape index: {}]   ;;  %s1196_s8 = inlined_call_operand.hbm [shape: f32[2,4,16,128], index: 8, kind: output, shape index: {}]  }
   0x1   :  { %1199 = sst [smem:[#allocation6_spill]] %s1188_s0 }
   0x2   :  { %13 = vsyncpa [#allocation3], 0 }
   0x3   :  { %15 = vsyncpa [#allocation3 + $0x1], 0  ;;  %s979_s27 = smov 0   ;;  %s981_s28 = smov 0  }
   0x4   :  { %s983_s29 = smov 0   ;;  %s985_s30 = smov 0  }
   0x5   :  { %s987_s9 = smov 0   ;;  %s989_s10 = smov 0  }
   0x6   :  { %s991_s11 = smov 0   ;;  %s993_s12 = smov 0  }
   0x7 LB: > { %s653_s13 = sadd.s32 4294967295, %s926_s12   ;;  %s654_s14 = sadd.s32 4294967294, %s926_s12   ;;  %s926_s12 = sphi %s993_s12, %s21_s12   ;;  %s922_s11 = sphi %s991_s11, %s1212_s11   ;;  %s918_s10 = sphi %s989_s10, %s1211_s10   ;;  %s914_s9 = sphi %s987_s9, %s1210_s9   ;;  %s910_s30 = sphi %s985_s30, %s1209_s30   ;;  %s906_s29 = sphi %s983_s29, %s1208_s29   ;;  %s902_s28 = sphi %s981_s28, %s1207_s28   ;;  %s898_s27 = sphi %s979_s27, %s1206_s27  }
   0x8   : > { %s30_s15 = sadd.s32 1, %s918_s10  ;;  %s33_s16 = sadd.s32 1, %s922_s11 }
   0x9   : > { %p31_p0 = scmp.ge.s32.totalorder %s30_s15, 2  ;;  %p235_p1 = scmp.ne.s32.totalorder %s906_s29, %s902_s28 }
   0xa   : > { %p236_p2 = scmp.eq.s32.totalorder %s653_s13, 3  ;;  %p241_p5 = scmp.ne.s32.totalorder %s902_s28, %s898_s27 }
   0xb   : > { %s1214_s15 = smov (%p31_p0, %s30_s15), 0  ;;  %s1216_s16 = smov (!%p31_p0, %s33_s16), %s922_s11 }
   0xc   : > { %1200 = sst [smem:[#allocation5_spill]] %s1214_s15  ;;  %s221_s17 = ssub.s32 %s918_s10, %s1214_s15 }
   0xd   : > { %p1030_p3 = por %p236_p2, %p235_p1  ;;  %p35_p4 = scmp.ge.s32.totalorder %s1216_s16, 2 }
   0xe   : > { %p242_p6 = scmp.eq.s32.totalorder %s654_s14, 3  ;;  %p657_p7 = scmp.ge.s32.totalorder %s926_s12, 1 }
   0xf   : > { %s1218_s16 = smov (%p35_p4, %s1216_s16), 0  ;;  %p299_p9 = scmp.lt.s32.totalorder %s926_s12, 5 }
  0x10   : > { %p1039_p8 = por %p242_p6, %p241_p5  ;;  %s220_s20 = ssub.s32 %s922_s11, %s1218_s16 }
  0x11   : > { %s225_s21 = sadd.s32 1, %s906_s29  ;;  %s222_s22 = sor.u32 %s221_s17, %s220_s20 }
  0x12   : > { %p300_p10 = pnand %p657_p7, %p299_p9  ;;  %p223_p11 = scmp.eq.s32.totalorder %s222_s22, 0 }
  0x13   : > { %v358_v0 = vld [vmem:[%s1189_s1] sm:$0xff] (!%p300_p10)  ;;  %v359_v1 = vld [vmem:[%s1189_s1 + $0x8] sm:$0xff] (!%p300_p10)  ;;  %v360_v2 = vld [vmem:[%s1189_s1 + $0x10] sm:$0xff] (!%p300_p10)  ;;  %v928_v3 = vmov (!%p300_p10), 0.0|0.0   ;;  %vm929_vm0 = vmmov (!%p300_p10), 0   ;;  %v930_v6 = vmov (!%p300_p10), 0.0   ;;  %v523_v39 = vlaneseq (!%p300_p10) }
  0x14   : > { %s1048_s23 = scalar_select %p223_p11, %s906_s29, %s225_s21  }
  0x15   : > { %303 = sbr.rel (%p300_p10) target bundleno = 503 (0x1f7), region = 52  ;;  %732 = vmatprep.subr.bf16.mxu0 (!%p300_p10), %v928_v3  ;;  %v733_v4 = vpack.c.bf16 (!%p300_p10), %v359_v1, %v358_v0  ;;  %v361_v5 = vld [vmem:[%s1189_s1 + $0x18] sm:$0xff] (!%p300_p10)  ;;  %724 = vmatprep.mubr.msk.f32.mxu0 (!%p300_p10), %vm929_vm0, %v930_v6  ;;  %v362_v8 = vld [vmem:[%s1189_s1 + $0x20] sm:$0xff] (!%p300_p10)  ;;  %v363_v9 = vld [vmem:[%s1189_s1 + $0x28] sm:$0xff] (!%p300_p10)  ;;  %p341_p12 = scmp.lt.s32.totalorder (!%p300_p10), %s914_s9, 1  ;;  %vm448_vm1 = vcmask (!%p300_p10), 64512  }
  0x16   : > { %727 = vmatprep.subr.mxu1 (!%p300_p10), %v930_v6  ;;  %729 = vmatprep.mubr.msk.f32.mxu1 (!%p300_p10), %vm929_vm0, %v930_v6  ;;  %v736_v7 = vpack.c.bf16 (!%p300_p10), %v361_v5, %v360_v2  ;;  %v739_v10 = vpack.c.bf16 (!%p300_p10), %v363_v9, %v362_v8  ;;  %v364_v11 = vld [vmem:[%s1189_s1 + $0x30] sm:$0xff] (!%p300_p10)  ;;  %v365_v12 = vld [vmem:[%s1189_s1 + $0x38] sm:$0xff] (!%p300_p10)  ;;  %v366_v14 = vld [vmem:[%s1189_s1 + $0x40] sm:$0xff] (!%p300_p10)  ;;  %s1203_s0 = sld [smem:[#allocation6_spill]] (!%p300_p10)  ;;  %s1198_s15 = sand.u32 (!%p300_p10), 1, %s902_s28   ;;  %v524_v40 = vshrl.u32 (!%p300_p10), %v523_v39, 7 }
  0x17   : > { %734 = vmatpush3.bf16.msra.mxu0 (!%p300_p10), %v733_v4  ;;  %v742_v13 = vpack.c.bf16 (!%p300_p10), %v365_v12, %v364_v11  ;;  %v367_v15 = vld [vmem:[%s1189_s1 + $0x48] sm:$0xff] (!%p300_p10)  ;;  %v368_v17 = vld [vmem:[%s1189_s1 + $0x50] sm:$0xff] (!%p300_p10)  ;;  %v369_v18 = vld [vmem:[%s1189_s1 + $0x58] sm:$0xff] (!%p300_p10)  ;;  %s659_s24 = sshll.u32 (!%p300_p10), %s910_s30, 1  ;;  %s667_s13 = sshll.u32 (!%p300_p10), %s914_s9, 3 }
  0x18   : > { %735 = vmatprep.subr.bf16.mxu0 (!%p300_p10), %v928_v3  ;;  %v745_v16 = vpack.c.bf16 (!%p300_p10), %v367_v15, %v366_v14  ;;  %v748_v19 = vpack.c.bf16 (!%p300_p10), %v369_v18, %v368_v17  ;;  %v370_v20 = vld [vmem:[%s1189_s1 + $0x60] sm:$0xff] (!%p300_p10)  ;;  %v371_v21 = vld [vmem:[%s1189_s1 + $0x68] sm:$0xff] (!%p300_p10)  ;;  %v372_v23 = vld [vmem:[%s1189_s1 + $0x70] sm:$0xff] (!%p300_p10)  ;;  %p345_p13 = scmp.lt.s32.totalorder (!%p300_p10), %s659_s24, 3  ;;  %v525_v42 = vsub.s32 (!%p300_p10), 0, %v524_v40 }
  0x19   : > { %v751_v22 = vpack.c.bf16 (!%p300_p10), %v371_v21, %v370_v20  ;;  %v373_v24 = vld [vmem:[%s1189_s1 + $0x78] sm:$0xff] (!%p300_p10)  ;;  %v446_v27 = vld [vmem:[%s1191_s3] sm:$0xff] (!%p300_p10) }
  0x1a   : > { %v754_v25 = vpack.c.bf16 (!%p300_p10), %v373_v24, %v372_v23  ;;  %728 = vmatpush3.msra.mxu1 (!%p300_p10), %v446_v27  ;;  %v374_v28 = vld [vmem:[%s1190_s2] sm:$0x1] (!%p300_p10) }
  0x1b   : > { %737 = vmatpush3.bf16.msra.mxu0 (!%p300_p10), %v736_v7  ;;  %v447_v41 = vld [vmem:[%s1192_s4] sm:$0x1] (!%p300_p10) }
  0x1c   : > { %738 = vmatprep.subr.bf16.mxu0 %v928_v3  ;;  %s342_s25 = scalar_select %p341_p12, %s914_s9, 1  ;;  %v522_v46 = vld [vmem:[%s1193_s5] sm:$0xf] }
  0x1d   : > { %s1220_s24 = smov (!%p345_p13, %s659_s24), 3 }
  0x1e   : > { %s343_s14 = scalar_lea.vmem %s1203_s0, %s342_s25  ;;  %s658_s25 = sshll.u32 %s1198_s15, 5 }
  0x1f   : > { %740 = vmatpush3.bf16.msra.mxu0 %v739_v10  ;;  %v357_v26 = vld [vmem:[%s343_s14] sm:$0x1]  ;;  %s671_s26 = sshll.u32 %s1220_s24, 4  ;;  %s347_s17 = scalar_lea.vmem %s1194_s6, %s1220_s24 }
  0x20   : > { %741 = vmatprep.subr.bf16.mxu0 %v928_v3  ;;  %s354_s22 = scalar_lea.vmem %s1195_s7, %s671_s26  ;;  %v528_v33 = vld [vmem:[%s347_s17] sm:$0x1]  ;;  %v529_v34 = vld [vmem:[%s347_s17 + $0x1] sm:$0x1]  ;;  %s340_s0 = scalar_lea.vmem [#allocation2], %s658_s25 }
  0x21   : > { %v534_v35 = vld [vmem:[%s354_s22] sm:$0xff]  ;;  %530 = vst [vmem:[%s340_s0] sm:$0x1] %v528_v33  ;;  %531 = vst [vmem:[%s340_s0 + $0x10] sm:$0x1] %v529_v34  ;;  %v535_v36 = vld [vmem:[%s354_s22 + $0x8] sm:$0x7] }
  0x22   : > { %v536_v37 = vld [vmem:[%s354_s22 + $0x10] sm:$0xff]  ;;  %v537_v38 = vld [vmem:[%s354_s22 + $0x18] sm:$0x7]  ;;  %538 = vst [vmem:[%s340_s0 + $0x5] sm:$0xff] %v534_v35  ;;  %539 = vst [vmem:[%s340_s0 + $0xd] sm:$0x7] %v535_v36 }
  0x23   : > { %743 = vmatpush3.bf16.msra.mxu0 %v742_v13  ;;  %540 = vst [vmem:[%s340_s0 + $0x15] sm:$0xff] %v536_v37  ;;  %541 = vst [vmem:[%s340_s0 + $0x1d] sm:$0x7] %v537_v38  ;;  %s672_s24 = sshll.u32 %s910_s30, 2  ;;  %s559_s20 = sshll.u32 %s340_s0, 4  ;;  %s1132_s20 = int_to_ptr.vmem [resolvable:$true] %s559_s20 }
  0x24   : > { %744 = vmatprep.subr.bf16.mxu0 %v928_v3  ;;  %s556_s17 = sadd.s32 %s672_s24, %s667_s13  ;;  %s1204_s24 = sand.u32 1, %s902_s28  }
  0x25   : > { %s668_s25 = sshll.u32 %s556_s17, 7  ;;  %s1136_s13 = scalar_lea.sflag [#allocation3], %s1204_s24 }
  0x26   : > { %s1130_s15 = scalar_lea.hbm %s1196_s8, %s668_s25  ;;  %s832_s26 = scalar_lea.vmem %s1132_s20, 512 }
  0x27   : > { %746 = vmatpush3.bf16.msra.mxu0 %v745_v16  ;;  %p833_p0 = scmp.ne.s32.totalorder %s1132_s20, %s832_s26  ;;  %s931_s14 = smov [#allocation2]  }
  0x28   : > { %747 = vmatprep.subr.bf16.mxu0 %v928_v3  ;;  %s836_s17 = sshll.u32 %s931_s14, 4  ;;  %s837_s17 = int_to_ptr.vmem [resolvable:$false] %s836_s17 }
  0x29   : > { %p834_p1 = pnand %p833_p0, %p1030_p3  ;;  %s838_s25 = scalar_lea.vmem %s837_s17, 1024 }
  0x2a   : > { %p839_p4 = scmp.lt.s32.totalorder %s1132_s20, %s837_s17  ;;  %p840_p5 = scmp.lt.s32.totalorder %s838_s25, %s832_s26 }
  0x2b   : > { %749 = vmatpush3.bf16.msra.mxu0 %v748_v19  ;;  %p835_p2 = pneg %p834_p1 }
  0x2c   : > { %750 = vmatprep.subr.bf16.mxu0 %v928_v3  ;;  %p841_p6 = por %p840_p5, %p839_p4 }
  0x2e   : > { %p842_p7 = pnand %p841_p6, %p835_p2 }
  0x2f   : > { %752 = vmatpush3.bf16.msra.mxu0 %v751_v22 }
  0x30   : > { %753 = vmatprep.subr.bf16.mxu0 %v928_v3 }
  0x33   : > { %755 = vmatpush3.bf16.msra.mxu0 %v754_v25 }
  0x36   : > { %725 = vmatmul.mubr.f32.vlgmr.msra.gmra.mrb[0].mxu0 %v357_v26 }
 0x109   : > { %v441_v29 = vpop.f32.mrb[0].mxu0 }
 0x10a   : > { %v442_v30 = vadd.f32 %v441_v29, %v374_v28  ;;  %v726_v31 = vpop.f32.mrb[1].mxu0 }
 0x10c   : > { %v445_v32 = vmax.f32 %v442_v30, 0.0 }
 0x10e   : > { %730 = vmatmul.mubr.msk.f32.vlgmr.msra.gmra.mrb[0].mxu1 %vm448_vm1, %v445_v32 }
 0x1e1   : > { %v518_v43 = vpop.f32.mrb[0].mxu1 }
 0x1e2   : > { %v519_v44 = vadd.f32 %v518_v43, %v447_v41  ;;  %v731_v45 = vpop.f32.mrb[1].mxu1 }
 0x1e4   : > { %v526_v47 = vrot.slane %v519_v44, %v525_v42 }
 0x1e6   : > { %v527_v48 = vadd.f32 %v526_v47, %v522_v46 }
 0x1e8   : > { %532 = vst [vmem:[%s340_s0 + $0x1] sm:$0xf] %v527_v48  ;;  %533 = vst [vmem:[%s340_s0 + $0x11] sm:$0xf] %v527_v48 }
 0x1e9   : > { %845 = shalt.err (!%p842_p7)
}
 0x1ea   : > { %s846_s0 = scalar_lea.hbm %s1130_s15, 512  ;;  %s850_s30 = scalar_lea.hbm %s1196_s8, 2048 }
 0x1eb   : > { %p847_p9 = scmp.ne.s32.totalorder %s1130_s15, %s846_s0  ;;  %p851_p12 = scmp.lt.u32.totalorder %s1130_s15, %s1196_s8 }
 0x1ec   : > { %p852_p13 = scmp.lt.u32.totalorder %s850_s30, %s846_s0  ;;  %p854_p1 = scmp.lt.u32.totalorder %s846_s0, %s1130_s15 }
 0x1ed   : > { %p848_p10 = pnand %p847_p9, %p1030_p3 }
 0x1ee   : > { %p853_p0 = por %p852_p13, %p851_p12 }
 0x1ef   : > { %p849_p11 = pneg %p848_p10 }
 0x1f0   : > { %p855_p2 = por %p854_p1, %p853_p0 }
 0x1f2   : > { %p856_p4 = pnand %p855_p2, %p849_p11 }
 0x1f4   : > { %859 = shalt.err (!%p856_p4)
}
 0x1f5   : > { %s932_s26 = smov 128   ;;  %s933_s14 = smov 8  }
 0x1f6   : > { %756 = dma.vmem_to_hbm [thread:$0]  (%p1030_p3), %s1132_s20, 512, %s1130_s15, %s1136_s13, %s932_s26, %s932_s26, %s933_s14  }
 0x1f7 PF: > { %p762_p5 = scmp.ge.s32.totalorder %s926_s12, 2  ;;  %s574_s17 = sand.u32 1, %s898_s27  }
 0x1f8   : > { %s575_s25 = scalar_lea.sflag [#allocation3], %s574_s17 }
 0x1f9   : > { %p759_p6 = pnand %p762_p5, %p1039_p8 }
 0x1fb   : > { %893 = dma.done.wait (!%p759_p6), %s575_s25, 512  }
 0x1fc   : > { %895 = vsyncadd (!%p759_p6), %s575_s25, 4294966784  ;;  %s21_s12 = sadd.s32 1, %s926_s12   ;;  %s1205_s18 = sld [smem:[#allocation5_spill]] }
 0x1fd   : > { %p18_p7 = scmp.ge.s32.totalorder %s21_s12, 6   ;;  %s1206_s27 = smov %s902_s28 }
 0x1fe   : > { %s1207_s28 = smov %s906_s29  ;;  %s1208_s29 = smov %s1048_s23 }
 0x1ff   : > { %s1209_s30 = smov %s918_s10  ;;  %s1210_s9 = smov %s922_s11 }
 0x200   : > { %s1212_s11 = smov %s1218_s16  ;;  %20 = sbr.rel (!%p18_p7) target bundleno = 7 (0x7), region = 93 }
 0x202   : > { %s1211_s10 = smov %s1205_s18 }
 0x207   :  { %580 = vsyncpa [#allocation3], 1 }
 0x208   :  { %582 = vsyncpa [#allocation3 + $0x1], 1 }

</bundles_post_ra>
